<compile_context>
chip_gen: v5e
topology: v5e:2x2
jax: 0.10.0
libtpu: 0.0.40
codegen_flags: <defaults>
</compile_context>

<pallas_src>
import functools

import jax
import jax.numpy as jnp
from jax.experimental import pallas as pl
from jax.experimental.pallas import tpu as pltpu


def _basic_block_kernel(W, PAD, x_ref, w1_ref, s1_ref, b1_ref,
                        w2_ref, s2_ref, b2_ref, o_ref, xf_ref):
    # x_ref  : (R, S)  f32, R = Nb*Cin rows = (sample, channel) on sublanes,
    #                  S = H*W flattened spatial on lanes
    # w1_ref : (9, R, R) bf16 block-diagonal per-tap weights (tap k = kh*3+kw)
    # s1/b1  : (R, 1)  f32 folded BN1 scale / bias (tiled per sample)
    # w2_ref : (9, R, R) bf16
    # s2/b2  : (R, 1)  f32 folded BN2 scale / bias
    # o_ref  : (R, S)  f32 output block (lane- and sublane-dense)
    # xf_ref : (R, 2*PAD+S) f32 scratch: zero-haloed flat activation (shared
    #          by conv1 and conv2; halo zeros written each step, center
    #          overwritten per conv)
    R, S = x_ref.shape

    # Column-within-row index (lane axis) -> masks for the horizontal taps.
    col = jax.lax.broadcasted_iota(jnp.int32, (1, S), 1) % W
    left_edge = col == 0           # (w - 1) is out of bounds
    right_edge = col == W - 1      # (w + 1) is out of bounds

    def conv3x3(w_ref):
        # 9 accumulated matmuls: tap (dh, dw) is a lane-shifted slice of the
        # haloed scratch at offset (dh-1)*W + (dw-1); vertical OOB lands in
        # the zero halo, horizontal OOB is masked (in f32) per row edge.
        acc = None
        for dh in range(3):
            for dw in range(3):
                off = PAD + (dh - 1) * W + (dw - 1)
                tap = xf_ref[:, off:off + S]                       # (R, S) f32
                if dw == 0:
                    tap = jnp.where(left_edge, 0.0, tap)
                elif dw == 2:
                    tap = jnp.where(right_edge, 0.0, tap)
                k = dh * 3 + dw
                part = jnp.dot(w_ref[k], tap.astype(jnp.bfloat16),
                               preferred_element_type=jnp.float32)  # (R, S) f32
                acc = part if acc is None else acc + part
        return acc

    x = x_ref[...]                                                  # (R, S) f32

    # Zero halo (rewritten every step so the second v7x core is also covered).
    zeros_halo = jnp.zeros((R, PAD), jnp.float32)
    xf_ref[:, :PAD] = zeros_halo
    xf_ref[:, PAD + S:] = zeros_halo

    # ---- conv1 (3x3, stride 1, pad 1) -> BN1 -> ReLU ----
    xf_ref[:, PAD:PAD + S] = x                                      # dense, aligned
    out1 = jnp.maximum(conv3x3(w1_ref) * s1_ref[...] + b1_ref[...], 0.0)

    # ---- conv2 (3x3, stride 1, pad 1) -> BN2 ----
    xf_ref[:, PAD:PAD + S] = out1                                   # reuse scratch
    out2 = conv3x3(w2_ref) * s2_ref[...] + b2_ref[...]

    # ---- residual add (identity = x, no downsample) + ReLU ----
    o_ref[...] = jnp.maximum(out2 + x, 0.0).astype(o_ref.dtype)


def _pick_samples_per_step(N, C):
    """Smallest Nb dividing N with Nb*C a multiple of 8 (full f32 vreg rows).

    Picking the smallest such Nb also keeps the grid as long as possible so
    v7x's two TensorCores both get work under dimension_semantics=('parallel',).
    Falls back to Nb=N (block == full array rows, always legal) if no divisor
    of N gives a multiple-of-8 row count.
    """
    for nb in range(1, N + 1):
        if N % nb == 0 and (nb * C) % 8 == 0:
            return nb
    return N


def _fold_bn(gamma, beta, mean, var, eps, nb):
    inv = gamma / jnp.sqrt(var + eps)
    s = inv.reshape(-1, 1).astype(jnp.float32)
    b = (beta - mean * inv).reshape(-1, 1).astype(jnp.float32)
    return jnp.tile(s, (nb, 1)), jnp.tile(b, (nb, 1))


def _block_diag_taps(w, nb):
    # PyTorch conv weight (O, I, 3, 3) -> per-tap (9, O, I) -> block-diagonal
    # (9, nb*O, nb*I) so one matmul covers all nb samples of a grid step.
    Cout, Cin = w.shape[0], w.shape[1]
    w_taps = jnp.transpose(w, (2, 3, 0, 1)).reshape(9, Cout, Cin)
    eye = jnp.eye(nb, dtype=jnp.float32)
    w_bd = jnp.einsum("ab,koi->kaobi", eye, w_taps.astype(jnp.float32))
    return w_bd.reshape(9, nb * Cout, nb * Cin).astype(jnp.bfloat16)


def basic_block_pallas(x_nchw, w1, gamma1, beta1, mean1, var1,
                       w2, gamma2, beta2, mean2, var2, eps=1e-5):
    N, Cin, H, W = x_nchw.shape
    Cout = w1.shape[0]
    assert Cin == Cout, "no downsample path -> inplanes must equal planes"
    # TODO(synk): training-mode BatchNorm (batch-stat updates), stride>1 and the
    # optional downsample projection are not implemented; eval-mode forward only.

    S = H * W
    PAD = ((W + 1 + 127) // 128) * 128      # zero-halo width, lane-aligned

    Nb = _pick_samples_per_step(N, Cin)
    R = Nb * Cin
    n_steps = N // Nb

    # NCHW -> (N*C, H*W): pure reshape, no transpose, no padded HBM copy.
    x = x_nchw.reshape(N * Cin, S)

    w1_bd = _block_diag_taps(w1, Nb)        # (9, R, R) bf16
    w2_bd = _block_diag_taps(w2, Nb)
    s1, b1 = _fold_bn(gamma1, beta1, mean1, var1, eps, Nb)   # (R, 1) f32
    s2, b2 = _fold_bn(gamma2, beta2, mean2, var2, eps, Nb)

    # Per-step VMEM footprint (double-buffered blocks + single scratch), with
    # 2x headroom; clamp so the same kernel fits v7x's 64 MiB physical VMEM.
    blk_bytes = R * S * 4
    w_bytes = 2 * 9 * R * R * 2 + 4 * R * 4
    scratch_bytes = R * (2 * PAD + S) * 4
    need = 2 * (2 * blk_bytes + w_bytes) + scratch_bytes
    vmem_limit = int(min(64 * 1024 * 1024, max(2 * need, 4 * 1024 * 1024)))

    kernel = functools.partial(_basic_block_kernel, W, PAD)

    out = pl.pallas_call(
        kernel,
        out_shape=jax.ShapeDtypeStruct((N * Cout, S), x_nchw.dtype),
        grid_spec=pltpu.PrefetchScalarGridSpec(
            num_scalar_prefetch=0,
            grid=(n_steps,),
            in_specs=[
                pl.BlockSpec((R, S), lambda n: (n, 0)),
                pl.BlockSpec((9, R, R), lambda n: (0, 0, 0)),
                pl.BlockSpec((R, 1), lambda n: (0, 0)),
                pl.BlockSpec((R, 1), lambda n: (0, 0)),
                pl.BlockSpec((9, R, R), lambda n: (0, 0, 0)),
                pl.BlockSpec((R, 1), lambda n: (0, 0)),
                pl.BlockSpec((R, 1), lambda n: (0, 0)),
            ],
            out_specs=pl.BlockSpec((R, S), lambda n: (n, 0)),
            scratch_shapes=[
                pltpu.VMEM((R, 2 * PAD + S), jnp.float32),   # zero-haloed activation
            ],
        ),
        compiler_params=pltpu.CompilerParams(
            dimension_semantics=("parallel",),   # shard batch steps across TCs on v7x
            vmem_limit_bytes=vmem_limit,
        ),
    )(x, w1_bd, s1, b1, w2_bd, s2, b2)

    return out.reshape(N, Cout, H, W)            # back to NCHW (pure reshape)


def basic_block_reference(x, w1, gamma1, beta1, mean1, var1,
                          w2, gamma2, beta2, mean2, var2, eps=1e-5):
    """Plain-JAX f32 reference (mirrors the PyTorch forward, inference-mode BN)."""
    conv = lambda t, w: jax.lax.conv_general_dilated(
        t, w, window_strides=(1, 1), padding=((1, 1), (1, 1)),
        dimension_numbers=("NCHW", "OIHW", "NCHW"))
    bcast = lambda v: v[None, :, None, None]
    out = conv(x, w1)
    out = (out - bcast(mean1)) / jnp.sqrt(bcast(var1) + eps) * bcast(gamma1) + bcast(beta1)
    out = jnp.maximum(out, 0.0)
    out = conv(out, w2)
    out = (out - bcast(mean2)) / jnp.sqrt(bcast(var2) + eps) * bcast(gamma2) + bcast(beta2)
    out = out + x
    return jnp.maximum(out, 0.0)


if __name__ == "__main__":
    key = jax.random.PRNGKey(0)
    N, C, H, W = 2, 4, 16, 16  # inplanes = planes = 4, stride = 1, no downsample

    keys = jax.random.split(key, 11)
    x = jax.random.normal(keys[0], (N, C, H, W), jnp.float32)

    w1 = jax.random.normal(keys[1], (C, C, 3, 3), jnp.float32) * 0.1
    w2 = jax.random.normal(keys[2], (C, C, 3, 3), jnp.float32) * 0.1

    gamma1 = 1.0 + 0.1 * jax.random.normal(keys[3], (C,), jnp.float32)
    beta1 = 0.1 * jax.random.normal(keys[4], (C,), jnp.float32)
    mean1 = 0.1 * jax.random.normal(keys[5], (C,), jnp.float32)
    var1 = 0.5 + jax.random.uniform(keys[6], (C,), jnp.float32)

    gamma2 = 1.0 + 0.1 * jax.random.normal(keys[7], (C,), jnp.float32)
    beta2 = 0.1 * jax.random.normal(keys[8], (C,), jnp.float32)
    mean2 = 0.1 * jax.random.normal(keys[9], (C,), jnp.float32)
    var2 = 0.5 + jax.random.uniform(keys[10], (C,), jnp.float32)

    out = basic_block_pallas(x, w1, gamma1, beta1, mean1, var1,
                             w2, gamma2, beta2, mean2, var2)
    out = jax.block_until_ready(out)

    ref = basic_block_reference(x, w1, gamma1, beta1, mean1, var1,
                                w2, gamma2, beta2, mean2, var2)
    ref = jax.block_until_ready(ref)

    assert out.shape == (N, C, H, W)
    # Tolerance loosened vs the pure-f32 reference because the kernel feeds the
    # MXU bf16 operands (f32 accumulation); expected max abs error is ~1e-2.
    assert jnp.allclose(out, ref, rtol=2e-2, atol=2e-2), (
        f"max abs err = {jnp.max(jnp.abs(out - ref))}")
    print("KERNEL_OK")
</pallas_src>

<mosaic_0001>
module attributes {stable_mosaic.version = 11 : i64} {
  func.func @_basic_block_kernel(%arg0: i32, %arg1: memref<8x256xf32, #tpu.memory_space<vmem>>, %arg2: memref<9x8x8xbf16, #tpu.memory_space<vmem>>, %arg3: memref<8x1xf32, #tpu.memory_space<vmem>>, %arg4: memref<8x1xf32, #tpu.memory_space<vmem>>, %arg5: memref<9x8x8xbf16, #tpu.memory_space<vmem>>, %arg6: memref<8x1xf32, #tpu.memory_space<vmem>>, %arg7: memref<8x1xf32, #tpu.memory_space<vmem>>, %arg8: memref<8x256xf32, #tpu.memory_space<vmem>>, %arg9: memref<8x512xf32, #tpu.memory_space<vmem>>) attributes {dimension_semantics = [#tpu.dimension_semantics<parallel>], iteration_bounds = array<i64: 1>, scalar_prefetch = 0 : i64, scratch_operands = 1 : i64, tpu.core_type = #tpu.core_type<tc>, window_params = [{transform_indices = @transform_0, window_bounds = array<i64: 8, 256>}, {pipeline_mode = #tpu.pipeline_mode<synchronous>, transform_indices = @transform_1, window_bounds = array<i64: 9, 8, 8>}, {pipeline_mode = #tpu.pipeline_mode<synchronous>, transform_indices = @transform_2, window_bounds = array<i64: 8, 1>}, {pipeline_mode = #tpu.pipeline_mode<synchronous>, transform_indices = @transform_3, window_bounds = array<i64: 8, 1>}, {pipeline_mode = #tpu.pipeline_mode<synchronous>, transform_indices = @transform_4, window_bounds = array<i64: 9, 8, 8>}, {pipeline_mode = #tpu.pipeline_mode<synchronous>, transform_indices = @transform_5, window_bounds = array<i64: 8, 1>}, {pipeline_mode = #tpu.pipeline_mode<synchronous>, transform_indices = @transform_6, window_bounds = array<i64: 8, 1>}, {transform_indices = @transform_7, window_bounds = array<i64: 8, 256>}]} {
    %0 = tpu.iota {dimensions = array<i32: 1>} : vector<1x256xi32>
    %c16_i32 = arith.constant 16 : i32
    %c0_i32 = arith.constant 0 : i32
    %1 = arith.cmpi eq, %c16_i32, %c0_i32 : i32
    %c1_i32 = arith.constant 1 : i32
    %2 = arith.select %1, %c1_i32, %c16_i32 : i32
    %3 = vector.broadcast %2 : i32 to vector<1x256xi32>
    %4 = arith.remsi %0, %3 : vector<1x256xi32>
    %c0_i32_0 = arith.constant 0 : i32
    %5 = vector.broadcast %c0_i32_0 : i32 to vector<1x256xi32>
    %6 = arith.cmpi ne, %4, %5 : vector<1x256xi32>
    %c0_i32_1 = arith.constant 0 : i32
    %7 = vector.broadcast %c0_i32_1 : i32 to vector<1x256xi32>
    %8 = arith.cmpi slt, %4, %7 : vector<1x256xi32>
    %c0_i32_2 = arith.constant 0 : i32
    %9 = arith.cmpi slt, %2, %c0_i32_2 : i32
    %10 = vector.broadcast %9 : i1 to vector<1x256xi1>
    %11 = vector.broadcast %10 : vector<1x256xi1> to vector<1x256xi1>
    %12 = arith.xori %8, %11 : vector<1x256xi1>
    %13 = arith.andi %12, %6 : vector<1x256xi1>
    %14 = vector.broadcast %2 : i32 to vector<1x256xi32>
    %15 = arith.addi %4, %14 : vector<1x256xi32>
    %16 = arith.select %13, %15, %4 : vector<1x256xi1>, vector<1x256xi32>
    %c0_i32_3 = arith.constant 0 : i32
    %17 = vector.broadcast %c0_i32_3 : i32 to vector<1x256xi32>
    %18 = arith.cmpi eq, %16, %17 : vector<1x256xi32>
    %c15_i32 = arith.constant 15 : i32
    %19 = vector.broadcast %c15_i32 : i32 to vector<1x256xi32>
    %20 = arith.cmpi eq, %16, %19 : vector<1x256xi32>
    %c0 = arith.constant 0 : index
    %c0_4 = arith.constant 0 : index
    %21 = vector.load %arg1[%c0, %c0_4] : memref<8x256xf32, #tpu.memory_space<vmem>>, vector<8x256xf32>
    %cst = arith.constant 0.000000e+00 : f32
    %22 = vector.broadcast %cst : f32 to vector<8x128xf32>
    %c0_5 = arith.constant 0 : index
    %c0_6 = arith.constant 0 : index
    %23 = vector.load %arg9[%c0_5, %c0_6] : memref<8x512xf32, #tpu.memory_space<vmem>>, vector<8x128xf32>
    tpu.vector_store %arg9[%c0_5, %c0_6], %22 {strides = array<i32>} : memref<8x512xf32, #tpu.memory_space<vmem>>, vector<8x128xf32>,
    %c0_7 = arith.constant 0 : index
    %c384 = arith.constant 384 : index
    %24 = vector.load %arg9[%c0_7, %c384] : memref<8x512xf32, #tpu.memory_space<vmem>>, vector<8x128xf32>
    tpu.vector_store %arg9[%c0_7, %c384], %22 {strides = array<i32>} : memref<8x512xf32, #tpu.memory_space<vmem>>, vector<8x128xf32>,
    %c0_8 = arith.constant 0 : index
    %c128 = arith.constant 128 : index
    %25 = vector.load %arg9[%c0_8, %c128] : memref<8x512xf32, #tpu.memory_space<vmem>>, vector<8x256xf32>
    tpu.vector_store %arg9[%c0_8, %c128], %21 {strides = array<i32>} : memref<8x512xf32, #tpu.memory_space<vmem>>, vector<8x256xf32>,
    %c0_9 = arith.constant 0 : index
    %c111 = arith.constant 111 : index
    %26 = vector.load %arg9[%c0_9, %c111] : memref<8x512xf32, #tpu.memory_space<vmem>>, vector<8x256xf32>
    %cst_10 = arith.constant 0.000000e+00 : f32
    %27 = vector.shape_cast %18 : vector<1x256xi1> to vector<1x256xi1>
    %28 = vector.broadcast %27 : vector<1x256xi1> to vector<8x256xi1>
    %29 = vector.broadcast %cst_10 : f32 to vector<8x256xf32>
    %30 = arith.select %28, %29, %26 : vector<8x256xi1>, vector<8x256xf32>
    %c0_11 = arith.constant 0 : index
    %c0_12 = arith.constant 0 : index
    %c0_13 = arith.constant 0 : index
    %31 = vector.load %arg2[%c0_11, %c0_12, %c0_13] : memref<9x8x8xbf16, #tpu.memory_space<vmem>>, vector<1x8x8xbf16>
    %32 = vector.shape_cast %31 : vector<1x8x8xbf16> to vector<8x8xbf16>
    %33 = arith.truncf %30 : vector<8x256xf32> to vector<8x256xbf16>
    %cst_14 = arith.constant dense<0.000000e+00> : vector<8x256xf32>
    %34 = tpu.matmul %32, %33, %cst_14 {dimension_numbers = #tpu.dot_dimension_numbers<[1], [0], [0], [1], [0, 0, 1, 1], [], []>} : vector<8x8xbf16>, vector<8x256xbf16>, vector<8x256xf32> -> vector<8x256xf32>
    %c0_15 = arith.constant 0 : index
    %c112 = arith.constant 112 : index
    %35 = vector.load %arg9[%c0_15, %c112] : memref<8x512xf32, #tpu.memory_space<vmem>>, vector<8x256xf32>
    %c1 = arith.constant 1 : index
    %c0_16 = arith.constant 0 : index
    %c0_17 = arith.constant 0 : index
    %36 = vector.load %arg2[%c1, %c0_16, %c0_17] : memref<9x8x8xbf16, #tpu.memory_space<vmem>>, vector<1x8x8xbf16>
    %37 = vector.shape_cast %36 : vector<1x8x8xbf16> to vector<8x8xbf16>
    %38 = arith.truncf %35 : vector<8x256xf32> to vector<8x256xbf16>
    %cst_18 = arith.constant dense<0.000000e+00> : vector<8x256xf32>
    %39 = tpu.matmul %37, %38, %cst_18 {dimension_numbers = #tpu.dot_dimension_numbers<[1], [0], [0], [1], [0, 0, 1, 1], [], []>} : vector<8x8xbf16>, vector<8x256xbf16>, vector<8x256xf32> -> vector<8x256xf32>
    %40 = arith.addf %34, %39 : vector<8x256xf32>
    %c0_19 = arith.constant 0 : index
    %c113 = arith.constant 113 : index
    %41 = vector.load %arg9[%c0_19, %c113] : memref<8x512xf32, #tpu.memory_space<vmem>>, vector<8x256xf32>
    %cst_20 = arith.constant 0.000000e+00 : f32
    %42 = vector.shape_cast %20 : vector<1x256xi1> to vector<1x256xi1>
    %43 = vector.broadcast %42 : vector<1x256xi1> to vector<8x256xi1>
    %44 = vector.broadcast %cst_20 : f32 to vector<8x256xf32>
    %45 = arith.select %43, %44, %41 : vector<8x256xi1>, vector<8x256xf32>
    %c2 = arith.constant 2 : index
    %c0_21 = arith.constant 0 : index
    %c0_22 = arith.constant 0 : index
    %46 = vector.load %arg2[%c2, %c0_21, %c0_22] : memref<9x8x8xbf16, #tpu.memory_space<vmem>>, vector<1x8x8xbf16>
    %47 = vector.shape_cast %46 : vector<1x8x8xbf16> to vector<8x8xbf16>
    %48 = arith.truncf %45 : vector<8x256xf32> to vector<8x256xbf16>
    %cst_23 = arith.constant dense<0.000000e+00> : vector<8x256xf32>
    %49 = tpu.matmul %47, %48, %cst_23 {dimension_numbers = #tpu.dot_dimension_numbers<[1], [0], [0], [1], [0, 0, 1, 1], [], []>} : vector<8x8xbf16>, vector<8x256xbf16>, vector<8x256xf32> -> vector<8x256xf32>
    %50 = arith.addf %40, %49 : vector<8x256xf32>
    %c0_24 = arith.constant 0 : index
    %c127 = arith.constant 127 : index
    %51 = vector.load %arg9[%c0_24, %c127] : memref<8x512xf32, #tpu.memory_space<vmem>>, vector<8x256xf32>
    %cst_25 = arith.constant 0.000000e+00 : f32
    %52 = vector.shape_cast %18 : vector<1x256xi1> to vector<1x256xi1>
    %53 = vector.broadcast %52 : vector<1x256xi1> to vector<8x256xi1>
    %54 = vector.broadcast %cst_25 : f32 to vector<8x256xf32>
    %55 = arith.select %53, %54, %51 : vector<8x256xi1>, vector<8x256xf32>
    %c3 = arith.constant 3 : index
    %c0_26 = arith.constant 0 : index
    %c0_27 = arith.constant 0 : index
    %56 = vector.load %arg2[%c3, %c0_26, %c0_27] : memref<9x8x8xbf16, #tpu.memory_space<vmem>>, vector<1x8x8xbf16>
    %57 = vector.shape_cast %56 : vector<1x8x8xbf16> to vector<8x8xbf16>
    %58 = arith.truncf %55 : vector<8x256xf32> to vector<8x256xbf16>
    %cst_28 = arith.constant dense<0.000000e+00> : vector<8x256xf32>
    %59 = tpu.matmul %57, %58, %cst_28 {dimension_numbers = #tpu.dot_dimension_numbers<[1], [0], [0], [1], [0, 0, 1, 1], [], []>} : vector<8x8xbf16>, vector<8x256xbf16>, vector<8x256xf32> -> vector<8x256xf32>
    %60 = arith.addf %50, %59 : vector<8x256xf32>
    %c0_29 = arith.constant 0 : index
    %c128_30 = arith.constant 128 : index
    %61 = vector.load %arg9[%c0_29, %c128_30] : memref<8x512xf32, #tpu.memory_space<vmem>>, vector<8x256xf32>
    %c4 = arith.constant 4 : index
    %c0_31 = arith.constant 0 : index
    %c0_32 = arith.constant 0 : index
    %62 = vector.load %arg2[%c4, %c0_31, %c0_32] : memref<9x8x8xbf16, #tpu.memory_space<vmem>>, vector<1x8x8xbf16>
    %63 = vector.shape_cast %62 : vector<1x8x8xbf16> to vector<8x8xbf16>
    %64 = arith.truncf %61 : vector<8x256xf32> to vector<8x256xbf16>
    %cst_33 = arith.constant dense<0.000000e+00> : vector<8x256xf32>
    %65 = tpu.matmul %63, %64, %cst_33 {dimension_numbers = #tpu.dot_dimension_numbers<[1], [0], [0], [1], [0, 0, 1, 1], [], []>} : vector<8x8xbf16>, vector<8x256xbf16>, vector<8x256xf32> -> vector<8x256xf32>
    %66 = arith.addf %60, %65 : vector<8x256xf32>
    %c0_34 = arith.constant 0 : index
    %c129 = arith.constant 129 : index
    %67 = vector.load %arg9[%c0_34, %c129] : memref<8x512xf32, #tpu.memory_space<vmem>>, vector<8x256xf32>
    %cst_35 = arith.constant 0.000000e+00 : f32
    %68 = vector.shape_cast %20 : vector<1x256xi1> to vector<1x256xi1>
    %69 = vector.broadcast %68 : vector<1x256xi1> to vector<8x256xi1>
    %70 = vector.broadcast %cst_35 : f32 to vector<8x256xf32>
    %71 = arith.select %69, %70, %67 : vector<8x256xi1>, vector<8x256xf32>
    %c5 = arith.constant 5 : index
    %c0_36 = arith.constant 0 : index
    %c0_37 = arith.constant 0 : index
    %72 = vector.load %arg2[%c5, %c0_36, %c0_37] : memref<9x8x8xbf16, #tpu.memory_space<vmem>>, vector<1x8x8xbf16>
    %73 = vector.shape_cast %72 : vector<1x8x8xbf16> to vector<8x8xbf16>
    %74 = arith.truncf %71 : vector<8x256xf32> to vector<8x256xbf16>
    %cst_38 = arith.constant dense<0.000000e+00> : vector<8x256xf32>
    %75 = tpu.matmul %73, %74, %cst_38 {dimension_numbers = #tpu.dot_dimension_numbers<[1], [0], [0], [1], [0, 0, 1, 1], [], []>} : vector<8x8xbf16>, vector<8x256xbf16>, vector<8x256xf32> -> vector<8x256xf32>
    %76 = arith.addf %66, %75 : vector<8x256xf32>
    %c0_39 = arith.constant 0 : index
    %c143 = arith.constant 143 : index
    %77 = vector.load %arg9[%c0_39, %c143] : memref<8x512xf32, #tpu.memory_space<vmem>>, vector<8x256xf32>
    %cst_40 = arith.constant 0.000000e+00 : f32
    %78 = vector.shape_cast %18 : vector<1x256xi1> to vector<1x256xi1>
    %79 = vector.broadcast %78 : vector<1x256xi1> to vector<8x256xi1>
    %80 = vector.broadcast %cst_40 : f32 to vector<8x256xf32>
    %81 = arith.select %79, %80, %77 : vector<8x256xi1>, vector<8x256xf32>
    %c6 = arith.constant 6 : index
    %c0_41 = arith.constant 0 : index
    %c0_42 = arith.constant 0 : index
    %82 = vector.load %arg2[%c6, %c0_41, %c0_42] : memref<9x8x8xbf16, #tpu.memory_space<vmem>>, vector<1x8x8xbf16>
    %83 = vector.shape_cast %82 : vector<1x8x8xbf16> to vector<8x8xbf16>
    %84 = arith.truncf %81 : vector<8x256xf32> to vector<8x256xbf16>
    %cst_43 = arith.constant dense<0.000000e+00> : vector<8x256xf32>
    %85 = tpu.matmul %83, %84, %cst_43 {dimension_numbers = #tpu.dot_dimension_numbers<[1], [0], [0], [1], [0, 0, 1, 1], [], []>} : vector<8x8xbf16>, vector<8x256xbf16>, vector<8x256xf32> -> vector<8x256xf32>
    %86 = arith.addf %76, %85 : vector<8x256xf32>
    %c0_44 = arith.constant 0 : index
    %c144 = arith.constant 144 : index
    %87 = vector.load %arg9[%c0_44, %c144] : memref<8x512xf32, #tpu.memory_space<vmem>>, vector<8x256xf32>
    %c7 = arith.constant 7 : index
    %c0_45 = arith.constant 0 : index
    %c0_46 = arith.constant 0 : index
    %88 = vector.load %arg2[%c7, %c0_45, %c0_46] : memref<9x8x8xbf16, #tpu.memory_space<vmem>>, vector<1x8x8xbf16>
    %89 = vector.shape_cast %88 : vector<1x8x8xbf16> to vector<8x8xbf16>
    %90 = arith.truncf %87 : vector<8x256xf32> to vector<8x256xbf16>
    %cst_47 = arith.constant dense<0.000000e+00> : vector<8x256xf32>
    %91 = tpu.matmul %89, %90, %cst_47 {dimension_numbers = #tpu.dot_dimension_numbers<[1], [0], [0], [1], [0, 0, 1, 1], [], []>} : vector<8x8xbf16>, vector<8x256xbf16>, vector<8x256xf32> -> vector<8x256xf32>
    %92 = arith.addf %86, %91 : vector<8x256xf32>
    %c0_48 = arith.constant 0 : index
    %c145 = arith.constant 145 : index
    %93 = vector.load %arg9[%c0_48, %c145] : memref<8x512xf32, #tpu.memory_space<vmem>>, vector<8x256xf32>
    %cst_49 = arith.constant 0.000000e+00 : f32
    %94 = vector.shape_cast %20 : vector<1x256xi1> to vector<1x256xi1>
    %95 = vector.broadcast %94 : vector<1x256xi1> to vector<8x256xi1>
    %96 = vector.broadcast %cst_49 : f32 to vector<8x256xf32>
    %97 = arith.select %95, %96, %93 : vector<8x256xi1>, vector<8x256xf32>
    %c8 = arith.constant 8 : index
    %c0_50 = arith.constant 0 : index
    %c0_51 = arith.constant 0 : index
    %98 = vector.load %arg2[%c8, %c0_50, %c0_51] : memref<9x8x8xbf16, #tpu.memory_space<vmem>>, vector<1x8x8xbf16>
    %99 = vector.shape_cast %98 : vector<1x8x8xbf16> to vector<8x8xbf16>
    %100 = arith.truncf %97 : vector<8x256xf32> to vector<8x256xbf16>
    %cst_52 = arith.constant dense<0.000000e+00> : vector<8x256xf32>
    %101 = tpu.matmul %99, %100, %cst_52 {dimension_numbers = #tpu.dot_dimension_numbers<[1], [0], [0], [1], [0, 0, 1, 1], [], []>} : vector<8x8xbf16>, vector<8x256xbf16>, vector<8x256xf32> -> vector<8x256xf32>
    %102 = arith.addf %92, %101 : vector<8x256xf32>
    %c0_53 = arith.constant 0 : index
    %c0_54 = arith.constant 0 : index
    %103 = vector.load %arg3[%c0_53, %c0_54] : memref<8x1xf32, #tpu.memory_space<vmem>>, vector<8x1xf32>
    %104 = vector.broadcast %103 : vector<8x1xf32> to vector<8x256xf32>
    %105 = arith.mulf %102, %104 : vector<8x256xf32>
    %c0_55 = arith.constant 0 : index
    %c0_56 = arith.constant 0 : index
    %106 = vector.load %arg4[%c0_55, %c0_56] : memref<8x1xf32, #tpu.memory_space<vmem>>, vector<8x1xf32>
    %107 = vector.broadcast %106 : vector<8x1xf32> to vector<8x256xf32>
    %108 = arith.addf %105, %107 : vector<8x256xf32>
    %cst_57 = arith.constant 0.000000e+00 : f32
    %109 = vector.broadcast %cst_57 : f32 to vector<8x256xf32>
    %110 = arith.maximumf %108, %109 : vector<8x256xf32>
    %c0_58 = arith.constant 0 : index
    %c128_59 = arith.constant 128 : index
    %111 = vector.load %arg9[%c0_58, %c128_59] : memref<8x512xf32, #tpu.memory_space<vmem>>, vector<8x256xf32>
    tpu.vector_store %arg9[%c0_58, %c128_59], %110 {strides = array<i32>} : memref<8x512xf32, #tpu.memory_space<vmem>>, vector<8x256xf32>,
    %c0_60 = arith.constant 0 : index
    %c111_61 = arith.constant 111 : index
    %112 = vector.load %arg9[%c0_60, %c111_61] : memref<8x512xf32, #tpu.memory_space<vmem>>, vector<8x256xf32>
    %cst_62 = arith.constant 0.000000e+00 : f32
    %113 = vector.shape_cast %18 : vector<1x256xi1> to vector<1x256xi1>
    %114 = vector.broadcast %113 : vector<1x256xi1> to vector<8x256xi1>
    %115 = vector.broadcast %cst_62 : f32 to vector<8x256xf32>
    %116 = arith.select %114, %115, %112 : vector<8x256xi1>, vector<8x256xf32>
    %c0_63 = arith.constant 0 : index
    %c0_64 = arith.constant 0 : index
    %c0_65 = arith.constant 0 : index
    %117 = vector.load %arg5[%c0_63, %c0_64, %c0_65] : memref<9x8x8xbf16, #tpu.memory_space<vmem>>, vector<1x8x8xbf16>
    %118 = vector.shape_cast %117 : vector<1x8x8xbf16> to vector<8x8xbf16>
    %119 = arith.truncf %116 : vector<8x256xf32> to vector<8x256xbf16>
    %cst_66 = arith.constant dense<0.000000e+00> : vector<8x256xf32>
    %120 = tpu.matmul %118, %119, %cst_66 {dimension_numbers = #tpu.dot_dimension_numbers<[1], [0], [0], [1], [0, 0, 1, 1], [], []>} : vector<8x8xbf16>, vector<8x256xbf16>, vector<8x256xf32> -> vector<8x256xf32>
    %c0_67 = arith.constant 0 : index
    %c112_68 = arith.constant 112 : index
    %121 = vector.load %arg9[%c0_67, %c112_68] : memref<8x512xf32, #tpu.memory_space<vmem>>, vector<8x256xf32>
    %c1_69 = arith.constant 1 : index
    %c0_70 = arith.constant 0 : index
    %c0_71 = arith.constant 0 : index
    %122 = vector.load %arg5[%c1_69, %c0_70, %c0_71] : memref<9x8x8xbf16, #tpu.memory_space<vmem>>, vector<1x8x8xbf16>
    %123 = vector.shape_cast %122 : vector<1x8x8xbf16> to vector<8x8xbf16>
    %124 = arith.truncf %121 : vector<8x256xf32> to vector<8x256xbf16>
    %cst_72 = arith.constant dense<0.000000e+00> : vector<8x256xf32>
    %125 = tpu.matmul %123, %124, %cst_72 {dimension_numbers = #tpu.dot_dimension_numbers<[1], [0], [0], [1], [0, 0, 1, 1], [], []>} : vector<8x8xbf16>, vector<8x256xbf16>, vector<8x256xf32> -> vector<8x256xf32>
    %126 = arith.addf %120, %125 : vector<8x256xf32>
    %c0_73 = arith.constant 0 : index
    %c113_74 = arith.constant 113 : index
    %127 = vector.load %arg9[%c0_73, %c113_74] : memref<8x512xf32, #tpu.memory_space<vmem>>, vector<8x256xf32>
    %cst_75 = arith.constant 0.000000e+00 : f32
    %128 = vector.shape_cast %20 : vector<1x256xi1> to vector<1x256xi1>
    %129 = vector.broadcast %128 : vector<1x256xi1> to vector<8x256xi1>
    %130 = vector.broadcast %cst_75 : f32 to vector<8x256xf32>
    %131 = arith.select %129, %130, %127 : vector<8x256xi1>, vector<8x256xf32>
    %c2_76 = arith.constant 2 : index
    %c0_77 = arith.constant 0 : index
    %c0_78 = arith.constant 0 : index
    %132 = vector.load %arg5[%c2_76, %c0_77, %c0_78] : memref<9x8x8xbf16, #tpu.memory_space<vmem>>, vector<1x8x8xbf16>
    %133 = vector.shape_cast %132 : vector<1x8x8xbf16> to vector<8x8xbf16>
    %134 = arith.truncf %131 : vector<8x256xf32> to vector<8x256xbf16>
    %cst_79 = arith.constant dense<0.000000e+00> : vector<8x256xf32>
    %135 = tpu.matmul %133, %134, %cst_79 {dimension_numbers = #tpu.dot_dimension_numbers<[1], [0], [0], [1], [0, 0, 1, 1], [], []>} : vector<8x8xbf16>, vector<8x256xbf16>, vector<8x256xf32> -> vector<8x256xf32>
    %136 = arith.addf %126, %135 : vector<8x256xf32>
    %c0_80 = arith.constant 0 : index
    %c127_81 = arith.constant 127 : index
    %137 = vector.load %arg9[%c0_80, %c127_81] : memref<8x512xf32, #tpu.memory_space<vmem>>, vector<8x256xf32>
    %cst_82 = arith.constant 0.000000e+00 : f32
    %138 = vector.shape_cast %18 : vector<1x256xi1> to vector<1x256xi1>
    %139 = vector.broadcast %138 : vector<1x256xi1> to vector<8x256xi1>
    %140 = vector.broadcast %cst_82 : f32 to vector<8x256xf32>
    %141 = arith.select %139, %140, %137 : vector<8x256xi1>, vector<8x256xf32>
    %c3_83 = arith.constant 3 : index
    %c0_84 = arith.constant 0 : index
    %c0_85 = arith.constant 0 : index
    %142 = vector.load %arg5[%c3_83, %c0_84, %c0_85] : memref<9x8x8xbf16, #tpu.memory_space<vmem>>, vector<1x8x8xbf16>
    %143 = vector.shape_cast %142 : vector<1x8x8xbf16> to vector<8x8xbf16>
    %144 = arith.truncf %141 : vector<8x256xf32> to vector<8x256xbf16>
    %cst_86 = arith.constant dense<0.000000e+00> : vector<8x256xf32>
    %145 = tpu.matmul %143, %144, %cst_86 {dimension_numbers = #tpu.dot_dimension_numbers<[1], [0], [0], [1], [0, 0, 1, 1], [], []>} : vector<8x8xbf16>, vector<8x256xbf16>, vector<8x256xf32> -> vector<8x256xf32>
    %146 = arith.addf %136, %145 : vector<8x256xf32>
    %c0_87 = arith.constant 0 : index
    %c128_88 = arith.constant 128 : index
    %147 = vector.load %arg9[%c0_87, %c128_88] : memref<8x512xf32, #tpu.memory_space<vmem>>, vector<8x256xf32>
    %c4_89 = arith.constant 4 : index
    %c0_90 = arith.constant 0 : index
    %c0_91 = arith.constant 0 : index
    %148 = vector.load %arg5[%c4_89, %c0_90, %c0_91] : memref<9x8x8xbf16, #tpu.memory_space<vmem>>, vector<1x8x8xbf16>
    %149 = vector.shape_cast %148 : vector<1x8x8xbf16> to vector<8x8xbf16>
    %150 = arith.truncf %147 : vector<8x256xf32> to vector<8x256xbf16>
    %cst_92 = arith.constant dense<0.000000e+00> : vector<8x256xf32>
    %151 = tpu.matmul %149, %150, %cst_92 {dimension_numbers = #tpu.dot_dimension_numbers<[1], [0], [0], [1], [0, 0, 1, 1], [], []>} : vector<8x8xbf16>, vector<8x256xbf16>, vector<8x256xf32> -> vector<8x256xf32>
    %152 = arith.addf %146, %151 : vector<8x256xf32>
    %c0_93 = arith.constant 0 : index
    %c129_94 = arith.constant 129 : index
    %153 = vector.load %arg9[%c0_93, %c129_94] : memref<8x512xf32, #tpu.memory_space<vmem>>, vector<8x256xf32>
    %cst_95 = arith.constant 0.000000e+00 : f32
    %154 = vector.shape_cast %20 : vector<1x256xi1> to vector<1x256xi1>
    %155 = vector.broadcast %154 : vector<1x256xi1> to vector<8x256xi1>
    %156 = vector.broadcast %cst_95 : f32 to vector<8x256xf32>
    %157 = arith.select %155, %156, %153 : vector<8x256xi1>, vector<8x256xf32>
    %c5_96 = arith.constant 5 : index
    %c0_97 = arith.constant 0 : index
    %c0_98 = arith.constant 0 : index
    %158 = vector.load %arg5[%c5_96, %c0_97, %c0_98] : memref<9x8x8xbf16, #tpu.memory_space<vmem>>, vector<1x8x8xbf16>
    %159 = vector.shape_cast %158 : vector<1x8x8xbf16> to vector<8x8xbf16>
    %160 = arith.truncf %157 : vector<8x256xf32> to vector<8x256xbf16>
    %cst_99 = arith.constant dense<0.000000e+00> : vector<8x256xf32>
    %161 = tpu.matmul %159, %160, %cst_99 {dimension_numbers = #tpu.dot_dimension_numbers<[1], [0], [0], [1], [0, 0, 1, 1], [], []>} : vector<8x8xbf16>, vector<8x256xbf16>, vector<8x256xf32> -> vector<8x256xf32>
    %162 = arith.addf %152, %161 : vector<8x256xf32>
    %c0_100 = arith.constant 0 : index
    %c143_101 = arith.constant 143 : index
    %163 = vector.load %arg9[%c0_100, %c143_101] : memref<8x512xf32, #tpu.memory_space<vmem>>, vector<8x256xf32>
    %cst_102 = arith.constant 0.000000e+00 : f32
    %164 = vector.shape_cast %18 : vector<1x256xi1> to vector<1x256xi1>
    %165 = vector.broadcast %164 : vector<1x256xi1> to vector<8x256xi1>
    %166 = vector.broadcast %cst_102 : f32 to vector<8x256xf32>
    %167 = arith.select %165, %166, %163 : vector<8x256xi1>, vector<8x256xf32>
    %c6_103 = arith.constant 6 : index
    %c0_104 = arith.constant 0 : index
    %c0_105 = arith.constant 0 : index
    %168 = vector.load %arg5[%c6_103, %c0_104, %c0_105] : memref<9x8x8xbf16, #tpu.memory_space<vmem>>, vector<1x8x8xbf16>
    %169 = vector.shape_cast %168 : vector<1x8x8xbf16> to vector<8x8xbf16>
    %170 = arith.truncf %167 : vector<8x256xf32> to vector<8x256xbf16>
    %cst_106 = arith.constant dense<0.000000e+00> : vector<8x256xf32>
    %171 = tpu.matmul %169, %170, %cst_106 {dimension_numbers = #tpu.dot_dimension_numbers<[1], [0], [0], [1], [0, 0, 1, 1], [], []>} : vector<8x8xbf16>, vector<8x256xbf16>, vector<8x256xf32> -> vector<8x256xf32>
    %172 = arith.addf %162, %171 : vector<8x256xf32>
    %c0_107 = arith.constant 0 : index
    %c144_108 = arith.constant 144 : index
    %173 = vector.load %arg9[%c0_107, %c144_108] : memref<8x512xf32, #tpu.memory_space<vmem>>, vector<8x256xf32>
    %c7_109 = arith.constant 7 : index
    %c0_110 = arith.constant 0 : index
    %c0_111 = arith.constant 0 : index
    %174 = vector.load %arg5[%c7_109, %c0_110, %c0_111] : memref<9x8x8xbf16, #tpu.memory_space<vmem>>, vector<1x8x8xbf16>
    %175 = vector.shape_cast %174 : vector<1x8x8xbf16> to vector<8x8xbf16>
    %176 = arith.truncf %173 : vector<8x256xf32> to vector<8x256xbf16>
    %cst_112 = arith.constant dense<0.000000e+00> : vector<8x256xf32>
    %177 = tpu.matmul %175, %176, %cst_112 {dimension_numbers = #tpu.dot_dimension_numbers<[1], [0], [0], [1], [0, 0, 1, 1], [], []>} : vector<8x8xbf16>, vector<8x256xbf16>, vector<8x256xf32> -> vector<8x256xf32>
    %178 = arith.addf %172, %177 : vector<8x256xf32>
    %c0_113 = arith.constant 0 : index
    %c145_114 = arith.constant 145 : index
    %179 = vector.load %arg9[%c0_113, %c145_114] : memref<8x512xf32, #tpu.memory_space<vmem>>, vector<8x256xf32>
    %cst_115 = arith.constant 0.000000e+00 : f32
    %180 = vector.shape_cast %20 : vector<1x256xi1> to vector<1x256xi1>
    %181 = vector.broadcast %180 : vector<1x256xi1> to vector<8x256xi1>
    %182 = vector.broadcast %cst_115 : f32 to vector<8x256xf32>
    %183 = arith.select %181, %182, %179 : vector<8x256xi1>, vector<8x256xf32>
    %c8_116 = arith.constant 8 : index
    %c0_117 = arith.constant 0 : index
    %c0_118 = arith.constant 0 : index
    %184 = vector.load %arg5[%c8_116, %c0_117, %c0_118] : memref<9x8x8xbf16, #tpu.memory_space<vmem>>, vector<1x8x8xbf16>
    %185 = vector.shape_cast %184 : vector<1x8x8xbf16> to vector<8x8xbf16>
    %186 = arith.truncf %183 : vector<8x256xf32> to vector<8x256xbf16>
    %cst_119 = arith.constant dense<0.000000e+00> : vector<8x256xf32>
    %187 = tpu.matmul %185, %186, %cst_119 {dimension_numbers = #tpu.dot_dimension_numbers<[1], [0], [0], [1], [0, 0, 1, 1], [], []>} : vector<8x8xbf16>, vector<8x256xbf16>, vector<8x256xf32> -> vector<8x256xf32>
    %188 = arith.addf %178, %187 : vector<8x256xf32>
    %c0_120 = arith.constant 0 : index
    %c0_121 = arith.constant 0 : index
    %189 = vector.load %arg6[%c0_120, %c0_121] : memref<8x1xf32, #tpu.memory_space<vmem>>, vector<8x1xf32>
    %190 = vector.broadcast %189 : vector<8x1xf32> to vector<8x256xf32>
    %191 = arith.mulf %188, %190 : vector<8x256xf32>
    %c0_122 = arith.constant 0 : index
    %c0_123 = arith.constant 0 : index
    %192 = vector.load %arg7[%c0_122, %c0_123] : memref<8x1xf32, #tpu.memory_space<vmem>>, vector<8x1xf32>
    %193 = vector.broadcast %192 : vector<8x1xf32> to vector<8x256xf32>
    %194 = arith.addf %191, %193 : vector<8x256xf32>
    %195 = arith.addf %194, %21 : vector<8x256xf32>
    %cst_124 = arith.constant 0.000000e+00 : f32
    %196 = vector.broadcast %cst_124 : f32 to vector<8x256xf32>
    %197 = arith.maximumf %195, %196 : vector<8x256xf32>
    %c0_125 = arith.constant 0 : index
    %c0_126 = arith.constant 0 : index
    %198 = vector.load %arg8[%c0_125, %c0_126] : memref<8x256xf32, #tpu.memory_space<vmem>>, vector<8x256xf32>
    tpu.vector_store %arg8[%c0_125, %c0_126], %197 {strides = array<i32>} : memref<8x256xf32, #tpu.memory_space<vmem>>, vector<8x256xf32>,
    return
  }
  func.func @transform_0(%arg0: i32) -> (i32, i32) {
    %c0_i32 = arith.constant 0 : i32
    %c0_i32_0 = arith.constant 0 : i32
    return %arg0, %c0_i32 : i32, i32
  }
  func.func @transform_1(%arg0: i32) -> (i32, i32, i32) {
    %c0_i32 = arith.constant 0 : i32
    %c0_i32_0 = arith.constant 0 : i32
    %c0_i32_1 = arith.constant 0 : i32
    %c0_i32_2 = arith.constant 0 : i32
    return %c0_i32, %c0_i32_0, %c0_i32_1 : i32, i32, i32
  }
  func.func @transform_2(%arg0: i32) -> (i32, i32) {
    %c0_i32 = arith.constant 0 : i32
    %c0_i32_0 = arith.constant 0 : i32
    %c0_i32_1 = arith.constant 0 : i32
    return %c0_i32, %c0_i32_0 : i32, i32
  }
  func.func @transform_3(%arg0: i32) -> (i32, i32) {
    %c0_i32 = arith.constant 0 : i32
    %c0_i32_0 = arith.constant 0 : i32
    %c0_i32_1 = arith.constant 0 : i32
    return %c0_i32, %c0_i32_0 : i32, i32
  }
  func.func @transform_4(%arg0: i32) -> (i32, i32, i32) {
    %c0_i32 = arith.constant 0 : i32
    %c0_i32_0 = arith.constant 0 : i32
    %c0_i32_1 = arith.constant 0 : i32
    %c0_i32_2 = arith.constant 0 : i32
    return %c0_i32, %c0_i32_0, %c0_i32_1 : i32, i32, i32
  }
  func.func @transform_5(%arg0: i32) -> (i32, i32) {
    %c0_i32 = arith.constant 0 : i32
    %c0_i32_0 = arith.constant 0 : i32
    %c0_i32_1 = arith.constant 0 : i32
    return %c0_i32, %c0_i32_0 : i32, i32
  }
  func.func @transform_6(%arg0: i32) -> (i32, i32) {
    %c0_i32 = arith.constant 0 : i32
    %c0_i32_0 = arith.constant 0 : i32
    %c0_i32_1 = arith.constant 0 : i32
    return %c0_i32, %c0_i32_0 : i32, i32
  }
  func.func @transform_7(%arg0: i32) -> (i32, i32) {
    %c0_i32 = arith.constant 0 : i32
    %c0_i32_0 = arith.constant 0 : i32
    return %arg0, %c0_i32 : i32, i32
  }
}

</mosaic_0001>

<bundles_post_ra>
// kernel: tpu_custom_call.1
= control target key start
LH: loop header
LB: loop body
LE: loop exit
PB: predicated region body
PF: predicated region fallthrough
CT: control target
= control target key end

     0   :  { %v1233_v1 = vmov 0.0|0.0   ;;  %s1234_s26 = smov 16   ;;  %s1602_s0 = inlined_call_operand.vmem [shape: f32[8,256], index: 0, kind: input, shape index: {}]   ;;  %s1603_s1 = inlined_call_operand.vmem [shape: bf16[9,8,8], index: 1, kind: input, shape index: {}]   ;;  %s1604_s2 = inlined_call_operand.vmem [shape: f32[8,1], index: 2, kind: input, shape index: {}]   ;;  %s1605_s3 = inlined_call_operand.vmem [shape: f32[8,1], index: 3, kind: input, shape index: {}]   ;;  %s1606_s4 = inlined_call_operand.vmem [shape: bf16[9,8,8], index: 4, kind: input, shape index: {}]   ;;  %s1607_s5 = inlined_call_operand.vmem [shape: f32[8,1], index: 5, kind: input, shape index: {}]   ;;  %s1608_s6 = inlined_call_operand.vmem [shape: f32[8,1], index: 6, kind: input, shape index: {}]   ;;  %s1609_s7 = inlined_call_operand.hbm [shape: f32[8,256], index: 7, kind: output, shape index: {}]  }
   0x1   :  { %v1288_v0 = vld [vmem:[%s1602_s0 + $0x8] sm:$0xff]  ;;  %99 = vrot.lane.b32.xlu0 %v1233_v1, %s1234_s26 }
   0x2   :  { %v1294_v2 = vpack.c.bf16 %v1288_v0, %v1288_v0 }
   0x3   :  { %12 = vsyncpa [#allocation4], 0  ;;  %v1299_v3 = vld [vmem:[%s1602_s0] sm:$0xff]  ;;  %s1235_s29 = smov 17   ;;  %v1236_v5 = vmov 0.0   ;;  %s1237_s30 = smov 15   ;;  %v28_v9 = vlaneseq }
   0x4   :  { %79 = vrot.lane.b32.xlu2 %v1288_v0, %s1235_s29  ;;  %103 = vrot.lane.b32.xlu1 %v1294_v2, %s1234_s26  ;;  %v94_v4 = vpack.c.bf16 %v1299_v3, %v1299_v3  ;;  %v1150_v6 = vpack.i.bf16 %v1299_v3, %v1236_v5  ;;  %s1238_s0 = smov 1   ;;  %v1160_v7 = vpack.i.bf16 %v1288_v0, %v1299_v3  ;;  %s1239_s8 = smov 127   ;;  %vm190_vm0 = vcmask 121856   ;;  %v1081_v33 = vld [vmem:[%s1603_s1 + $0x4] sm:$0xf] }
   0x5   :  { %s1240_s9 = smov 113   ;;  %s1241_s10 = smov 112   ;;  %v29_v11 = vand.u32 127, %v28_v9  ;;  %vm105_vm2 = vcmask 130048   ;;  %vm112_vm3 = vcmask 1043456   ;;  %vm81_vm4 = vcmask 138240  }
   0x6   :  { %s1242_s11 = smov 111   ;;  %vm108_vm5 = vcmask 64512   ;;  %v298_v36 = vsel %vm112_vm3, %v94_v4, 0  ;;  %v88_v49 = vld [vmem:[%s1603_s1] sm:$0xf]  ;;  %vm244_vm9 = vcmask 7168  }
   0x7   :  { %v35_v14 = vand.u32 15, %v29_v11  ;;  %v30_v20 = vadd.s32 128, %v29_v11  ;;  %vm397_vm10 = vcmask 924672   ;;  %v301_v57 = vsel %vm112_vm3, %v1294_v2, 0  ;;  %s1072_s12 = sshll.u32 %s1609_s7, 4  ;;  %s1073_s12 = int_to_ptr.hbm [resolvable:$true] %s1072_s12 }
   0x8   :  { %vm343_vm11 = vcmask 1039360   ;;  %vm459_vm12 = vcmask 916480   ;;  %vm505_vm13 = vcmask 908288  }
   0x9   :  { %101 = vrot.lane.b32.xlu0 %v94_v4, %s1234_s26  ;;  %vm1335_vm1 = vcmp.eq.s32.totalorder %v35_v14, 15  ;;  %v42_v22 = vand.u32 15, %v30_v20  ;;  %vm1350_vm6 = vcmp.eq.s32.totalorder %v35_v14, 0  ;;  %v1086_v14 = vld [vmem:[%s1603_s1 + $0x8] sm:$0xf] }
   0xb   :  { %vm1354_vm7 = vcmp.eq.s32.totalorder %v42_v22, 0  ;;  %vm1367_vm8 = vcmp.eq.s32.totalorder %v42_v22, 15 }
   0xc   :  { %1151 = vrot.lane.b32.xlu2 %v1150_v6, %s1237_s30  ;;  %1146 = vrot.lane.b32.xlu1 %v1150_v6, %s1235_s29 }
  0x11   :  { %188 = vrot.lane.b32.xlu0 %v1288_v0, %s1237_s30 }
  0x14   :  { %242 = vrot.lane.b32.xlu2 %v1288_v0, %s1238_s0  ;;  %1156 = vrot.lane.b32.xlu1 %v1150_v6, %s1238_s0 }
  0x19   :  { %1161 = vrot.lane.b32.xlu0 %v1160_v7, %s1239_s8 }
  0x1c   :  { %1166 = vrot.lane.b32.xlu2 %v1160_v7, %s1240_s9  ;;  %341 = vrot.lane.b32.xlu1 %v1236_v5, %s1239_s8 }
  0x21   :  { %395 = vrot.lane.b32.xlu0 %v1236_v5, %s1240_s9 }
  0x24   :  { %455 = vrot.lane.b32.xlu2 %v1294_v2, %s1241_s10  ;;  %453 = vrot.lane.b32.xlu1 %v94_v4, %s1241_s10 }
  0x29   :  { %457 = vrot.lane.b32.xlu0 %v1233_v1, %s1241_s10 }
  0x2c   :  { %503 = vrot.lane.b32.xlu2 %v1236_v5, %s1242_s11  ;;  %1171 = vrot.lane.b32.xlu1 %v1160_v7, %s1242_s11 }
  0x34   :  { %602 = vrot.lane.b32.xlu2 %v1233_v1, %s1234_s26 }
  0x5e   :  { %v80_v8 = vpop.permute.xlu2 %79 }
  0x66   :  { %v1152_v10 = vpop.permute.xlu2 %1151 }
  0x67   :  { %v1154_v12 = vunpack.i.h.bf16 %v1152_v10  ;;  %v1153_v13 = vunpack.i.l.bf16 %v1152_v10 }
  0x69   :  { %v191_v16 = vsel %vm190_vm0, %v1153_v13, %v1154_v12 }
  0x6a   :  { %v195_v19 = vsel %vm1335_vm1, 0.0, %v191_v16 }
  0x6b   :  { %v199_v21 = vpack.c.bf16 %v195_v19, %v195_v19 }
  0x6d   :  { %v205_v27 = vsel %vm112_vm3, %v199_v21, 0 }
  0x6e   :  { %v243_v23 = vpop.permute.xlu2 %242 }
  0x73   :  { %v100_v17 = vpop.permute.xlu0 %99 }
  0x76   :  { %v104_v18 = vpop.permute.xlu1 %103  ;;  %v1167_v44 = vpop.permute.xlu2 %1166 }
  0x77   :  { %v1169_v52 = vunpack.i.h.bf16 %v1167_v44  ;;  %v1168_v53 = vunpack.i.l.bf16 %v1167_v44 }
  0x79   :  { %v398_v63 = vsel %vm397_vm10, %v1168_v53, %v1169_v52 }
  0x7a   :  { %v402_v6 = vsel %vm1350_vm6, 0.0, %v398_v63 }
  0x7b   :  { %v102_v24 = vpop.permute.xlu0 %101 }
  0x7c   :  { %v106_v25 = vsel %vm105_vm2, %v100_v17, %v102_v24  ;;  %v107_v26 = vsel %vm105_vm2, %v102_v24, %v104_v18 }
  0x7d   :  { %v114_v29 = vsel %vm112_vm3, %v106_v25, 0  ;;  %v117_v30 = vsel %vm112_vm3, %v107_v26, 0 }
  0x7e   :  { %v1147_v28 = vpop.permute.xlu1 %1146  ;;  %126 = vmatpush.bf16.msra.mxu0 %v114_v29  ;;  %139 = vmatpush.bf16.msra.mxu1 %v117_v30  ;;  %v456_v26 = vpop.permute.xlu2 %455 }
  0x7f   :  { %v1149_v31 = vunpack.i.h.bf16 %v1147_v28  ;;  %v1148_v32 = vunpack.i.l.bf16 %v1147_v28  ;;  %v1089_v28 = vld [vmem:[%s1603_s1 + $0xc] sm:$0xf] }
  0x81   :  { %v83_v37 = vsel %vm81_vm4, %v1149_v31, %v80_v8  ;;  %v82_v38 = vsel %vm81_vm4, %v1148_v32, %v1149_v31  ;;  %1082 = vmatmul.msk.bf16.vlgmr.msra.gmra.mxu0 %vm108_vm5, %v1081_v33  ;;  %1083 = vmatmul.msk.bf16.vlgmr.msra.gmra.mxu1 %vm108_vm5, %v1081_v33  ;;  %v406_v8 = vpack.c.bf16 %v402_v6, %v402_v6 }
  0x82   :  { %217 = vmatpush.bf16.msrb.mxu0 %v205_v27  ;;  %v86_v39 = vsel %vm1350_vm6, 0.0, %v82_v38  ;;  %v87_v40 = vsel %vm1354_vm7, 0.0, %v83_v37 }
  0x83   :  { %v89_v41 = vpack.c.bf16 %v86_v39, %v86_v39  ;;  %v90_v42 = vpack.c.bf16 %v87_v40, %v87_v40  ;;  %v189_v45 = vpop.permute.xlu0 %188  ;;  %v412_v20 = vsel %vm112_vm3, %v406_v8, 0 }
  0x84   :  { %v192_v48 = vsel %vm190_vm0, %v1154_v12, %v189_v45 }
  0x85   :  { %v149_v46 = vsel %vm112_vm3, %v89_v41, 0  ;;  %v152_v47 = vsel %vm112_vm3, %v90_v42, 0  ;;  %v196_v51 = vsel %vm1367_vm8, 0.0, %v192_v48  ;;  %v1092_v42 = vld [vmem:[%s1603_s1 + $0x10] sm:$0xf] }
  0x86   :  { %310 = vmatpush.bf16.msra.mxu0 %v298_v36  ;;  %161 = vmatpush.bf16.msra.mxu2 %v149_v46  ;;  %v1157_v50 = vpop.permute.xlu1 %1156  ;;  %v200_v56 = vpack.c.bf16 %v196_v51, %v196_v51  ;;  %v504_v41 = vpop.permute.xlu2 %503  ;;  %v561_v51 = vld [vmem:[%s1605_s3] sm:$0xff] }
  0x87   :  { %174 = vmatpush.bf16.msra.mxu3 %v152_v47  ;;  %v1159_v54 = vunpack.i.h.bf16 %v1157_v50  ;;  %v1158_v55 = vunpack.i.l.bf16 %v1157_v50  ;;  %v553_v50 = vld [vmem:[%s1604_s2] sm:$0xff] }
  0x88   :  { %v208_v58 = vsel %vm112_vm3, %v200_v56, 0 }
  0x89   :  { %1084 = vmatmul.msk.bf16.vlgmr.msra.gmra.mxu2 %vm108_vm5, %v88_v49  ;;  %v246_v59 = vsel %vm244_vm9, %v1159_v54, %v243_v23  ;;  %v245_v60 = vsel %vm244_vm9, %v1158_v55, %v1159_v54  ;;  %230 = vmatpush.bf16.msrb.mxu1 %v208_v58  ;;  %v1243_v54 = vmov 0   ;;  %v1098_v58 = vld [vmem:[%s1603_s1 + $0x18] sm:$0xf] }
  0x8a   :  { %1085 = vmatmul.msk.bf16.vlgmr.msra.gmra.mxu3 %vm108_vm5, %v88_v49  ;;  %v249_v61 = vsel %vm1350_vm6, 0.0, %v245_v60  ;;  %v250_v62 = vsel %vm1354_vm7, 0.0, %v246_v59  ;;  %1175 = vset.pattern.permute.xlu0 %v1243_v54  ;;  %v1101_v59 = vld [vmem:[%s1603_s1 + $0x1c] sm:$0xf]  ;;  %v1104_v60 = vld [vmem:[%s1603_s1 + $0x20] sm:$0xf] }
  0x8b   :  { %v253_v2 = vpack.c.bf16 %v249_v61, %v249_v61  ;;  %v254_v4 = vpack.c.bf16 %v250_v62, %v250_v62  ;;  %v1162_v7 = vpop.permute.xlu0 %1161  ;;  %1176 = vset.pattern.permute.xlu1 %v1243_v54  ;;  %556 = vperm.xlu0 %1175, %v553_v50  }
  0x8c   :  { %v1164_v11 = vunpack.i.h.bf16 %v1162_v7  ;;  %v1163_v12 = vunpack.i.l.bf16 %v1162_v7  ;;  %564 = vperm.xlu1 %1176, %v561_v51  }
  0x8d   :  { %323 = vmatpush.bf16.msra.mxu1 %v301_v57  ;;  %v259_v9 = vsel %vm112_vm3, %v253_v2, 0  ;;  %v262_v10 = vsel %vm112_vm3, %v254_v4, 0  ;;  %v1095_v57 = vld [vmem:[%s1603_s1 + $0x14] sm:$0xf] }
  0x8e   :  { %271 = vmatpush.bf16.msrb.mxu2 %v259_v9  ;;  %284 = vmatpush.bf16.msrb.mxu3 %v262_v10  ;;  %v342_v13 = vpop.permute.xlu1 %341  ;;  %v344_v17 = vsel %vm343_vm11, %v1163_v12, %v1164_v11 }
  0x8f   :  { %v345_v16 = vsel %vm343_vm11, %v1164_v11, %v342_v13  ;;  %v348_v19 = vsel %vm1335_vm1, 0.0, %v344_v17 }
  0x90   :  { %v349_v18 = vsel %vm1367_vm8, 0.0, %v345_v16  ;;  %v352_v22 = vpack.c.bf16 %v348_v19, %v348_v19 }
  0x91   :  { %v353_v21 = vpack.c.bf16 %v349_v18, %v349_v18  ;;  %1087 = vmatmul.msk.bf16.vlgmr.msrb.gmra.mxu0 %vm108_vm5, %v1086_v14  ;;  %1088 = vmatmul.msk.bf16.vlgmr.msrb.gmra.mxu1 %vm108_vm5, %v1086_v14 }
  0x92   :  { %v358_v23 = vsel %vm112_vm3, %v352_v22, 0  ;;  %424 = vmatpush.bf16.msrb.mxu0 %v412_v20 }
  0x93   :  { %v361_v24 = vsel %vm112_vm3, %v353_v21, 0  ;;  %370 = vmatpush.bf16.msra.mxu2 %v358_v23  ;;  %v396_v25 = vpop.permute.xlu0 %395 }
  0x94   :  { %383 = vmatpush.bf16.msra.mxu3 %v361_v24  ;;  %v399_v27 = vsel %vm397_vm10, %v1169_v52, %v396_v25 }
  0x95   :  { %v403_v29 = vsel %vm1354_vm7, 0.0, %v399_v27 }
  0x96   :  { %v454_v30 = vpop.permute.xlu1 %453  ;;  %v407_v31 = vpack.c.bf16 %v403_v29, %v403_v29 }
  0x97   :  { %v460_v32 = vsel %vm459_vm12, %v454_v30, %v456_v26 }
  0x98   :  { %v466_v33 = vsel %vm112_vm3, %v460_v32, 0  ;;  %v415_v36 = vsel %vm112_vm3, %v407_v31, 0 }
  0x99   :  { %1090 = vmatmul.msk.bf16.vlgmr.msrb.gmra.mxu2 %vm108_vm5, %v1089_v28  ;;  %437 = vmatpush.bf16.msrb.mxu1 %v415_v36 }
  0x9a   :  { %1091 = vmatmul.msk.bf16.vlgmr.msrb.gmra.mxu3 %vm108_vm5, %v1089_v28  ;;  %478 = vmatpush.bf16.msrb.mxu2 %v466_v33 }
  0x9b   :  { %v458_v37 = vpop.permute.xlu0 %457 }
  0x9c   :  { %v461_v38 = vsel %vm459_vm12, %v456_v26, %v458_v37 }
  0x9d   :  { %v469_v39 = vsel %vm112_vm3, %v461_v38, 0 }
  0x9e   :  { %v1172_v40 = vpop.permute.xlu1 %1171  ;;  %491 = vmatpush.bf16.msrb.mxu3 %v469_v39 }
  0x9f   :  { %v1174_v44 = vunpack.i.h.bf16 %v1172_v40  ;;  %v1173_v45 = vunpack.i.l.bf16 %v1172_v40 }
  0xa1   :  { %v507_v46 = vsel %vm505_vm13, %v1174_v44, %v504_v41  ;;  %v506_v47 = vsel %vm505_vm13, %v1173_v45, %v1174_v44  ;;  %1093 = vmatmul.msk.bf16.vlgmr.msra.gmra.mxu0 %vm108_vm5, %v1092_v42  ;;  %1094 = vmatmul.msk.bf16.vlgmr.msra.gmra.mxu1 %vm108_vm5, %v1092_v42 }
  0xa2   :  { %v511_v48 = vsel %vm1367_vm8, 0.0, %v507_v46  ;;  %v510_v49 = vsel %vm1335_vm1, 0.0, %v506_v47 }
  0xa3   :  { %v515_v52 = vpack.c.bf16 %v511_v48, %v511_v48  ;;  %v514_v53 = vpack.c.bf16 %v510_v49, %v510_v49 }
  0xa5   :  { %v520_v55 = vsel %vm112_vm3, %v514_v53, 0  ;;  %v523_v56 = vsel %vm112_vm3, %v515_v52, 0 }
  0xa6   :  { %532 = vmatpush.bf16.msra.mxu0 %v520_v55  ;;  %545 = vmatpush.bf16.msra.mxu1 %v523_v56 }
  0xa9   :  { %1096 = vmatmul.msk.bf16.vlgmr.msra.gmra.mxu2 %vm108_vm5, %v1095_v57 }
  0xaa   :  { %1097 = vmatmul.msk.bf16.vlgmr.msra.gmra.mxu3 %vm108_vm5, %v1095_v57 }
  0xb1   :  { %1099 = vmatmul.msk.bf16.vlgmr.msrb.gmra.mxu0 %vm108_vm5, %v1098_v58  ;;  %1100 = vmatmul.msk.bf16.vlgmr.msrb.gmra.mxu1 %vm108_vm5, %v1098_v58 }
  0xb9   :  { %1102 = vmatmul.msk.bf16.vlgmr.msrb.gmra.mxu2 %vm108_vm5, %v1101_v59 }
  0xba   :  { %1103 = vmatmul.msk.bf16.vlgmr.msrb.gmra.mxu3 %vm108_vm5, %v1101_v59 }
  0xc1   :  { %1105 = vmatmul.msk.bf16.vlgmr.msra.gmra.mxu0 %vm108_vm5, %v1104_v60  ;;  %1106 = vmatmul.msk.bf16.vlgmr.msra.gmra.mxu1 %vm108_vm5, %v1104_v60 }
  0xfd   :  { %v557_v49 = vpop.permute.xlu0 %556 }
  0xfe   :  { %v128_v61 = vpop.f32.mrf.mxu0  ;;  %v141_v62 = vpop.f32.mrf.mxu1 }
  0xff   :  { %v565_v54 = vpop.permute.xlu1 %564 }
 0x106   :  { %v130_v63 = vpop.f32.mrf.mxu0  ;;  %v143_v2 = vpop.f32.mrf.mxu1 }
 0x10c   :  { %v163_v4 = vpop.f32.mrf.mxu2 }
 0x10d   :  { %v176_v6 = vpop.f32.mrf.mxu3  ;;  %v164_v22 = vadd.f32 %v163_v4, %v128_v61 }
 0x10e   :  { %v219_v7 = vpop.f32.mrf.mxu0  ;;  %v232_v8 = vpop.f32.mrf.mxu1  ;;  %v177_v23 = vadd.f32 %v176_v6, %v141_v62 }
 0x10f   :  { %v236_v26 = vadd.f32 %v219_v7, %v164_v22 }
 0x110   :  { %v237_v27 = vadd.f32 %v232_v8, %v177_v23 }
 0x114   :  { %v165_v9 = vpop.f32.mrf.mxu2 }
 0x115   :  { %v178_v10 = vpop.f32.mrf.mxu3  ;;  %v1043_v9 = vld [vmem:[%s1607_s5] sm:$0xff] }
 0x116   :  { %v221_v11 = vpop.f32.mrf.mxu0  ;;  %v234_v12 = vpop.f32.mrf.mxu1  ;;  %v1051_v10 = vld [vmem:[%s1608_s6] sm:$0xff] }
 0x117   :  { %v603_v11 = vpop.permute.xlu2 %602 }
 0x11c   :  { %v273_v13 = vpop.f32.mrf.mxu2 }
 0x11d   :  { %v286_v14 = vpop.f32.mrf.mxu3  ;;  %v290_v30 = vadd.f32 %v273_v13, %v236_v26 }
 0x11e   :  { %v312_v16 = vpop.f32.mrf.mxu0  ;;  %v325_v17 = vpop.f32.mrf.mxu1  ;;  %v291_v31 = vadd.f32 %v286_v14, %v237_v27 }
 0x11f   :  { %v329_v36 = vadd.f32 %v312_v16, %v290_v30  ;;  %v1107_v30 = vld [vmem:[%s1606_s4 + $0x4] sm:$0xf] }
 0x120   :  { %v330_v37 = vadd.f32 %v325_v17, %v291_v31 }
 0x124   :  { %v275_v18 = vpop.f32.mrf.mxu2 }
 0x125   :  { %v288_v19 = vpop.f32.mrf.mxu3 }
 0x126   :  { %v314_v20 = vpop.f32.mrf.mxu0  ;;  %v327_v21 = vpop.f32.mrf.mxu1 }
 0x12c   :  { %v372_v24 = vpop.f32.mrf.mxu2 }
 0x12d   :  { %v385_v25 = vpop.f32.mrf.mxu3  ;;  %v389_v38 = vadd.f32 %v372_v24, %v329_v36 }
 0x12e   :  { %v426_v28 = vpop.f32.mrf.mxu0  ;;  %v439_v29 = vpop.f32.mrf.mxu1  ;;  %v390_v39 = vadd.f32 %v385_v25, %v330_v37 }
 0x12f   :  { %v443_v42 = vadd.f32 %v426_v28, %v389_v38 }
 0x130   :  { %v444_v44 = vadd.f32 %v439_v29, %v390_v39 }
 0x134   :  { %v374_v32 = vpop.f32.mrf.mxu2 }
 0x135   :  { %v387_v33 = vpop.f32.mrf.mxu3 }
 0x136   :  { %v428_v40 = vpop.f32.mrf.mxu0  ;;  %v441_v41 = vpop.f32.mrf.mxu1 }
 0x13c   :  { %v480_v45 = vpop.f32.mrf.mxu2 }
 0x13d   :  { %v493_v46 = vpop.f32.mrf.mxu3  ;;  %v497_v47 = vadd.f32 %v480_v45, %v443_v42 }
 0x13e   :  { %v498_v48 = vadd.f32 %v493_v46, %v444_v44  ;;  %v534_v50 = vpop.f32.mrf.mxu0  ;;  %v547_v51 = vpop.f32.mrf.mxu1 }
 0x13f   :  { %v551_v52 = vadd.f32 %v534_v50, %v497_v47 }
 0x140   :  { %v552_v53 = vadd.f32 %v547_v51, %v498_v48 }
 0x141   :  { %v559_v55 = vmul.f32 %v557_v49, %v551_v52 }
 0x142   :  { %v560_v56 = vmul.f32 %v557_v49, %v552_v53 }
 0x143   :  { %v567_v57 = vadd.f32 %v565_v54, %v559_v55 }
 0x144   :  { %v568_v58 = vadd.f32 %v565_v54, %v560_v56  ;;  %v482_v59 = vpop.f32.mrf.mxu2 }
 0x145   :  { %v495_v60 = vpop.f32.mrf.mxu3  ;;  %v569_v61 = vmax.f32 %v567_v57, 0.0 }
 0x146   :  { %v570_v62 = vmax.f32 %v568_v58, 0.0  ;;  %v536_v63 = vpop.f32.mrf.mxu0  ;;  %v549_v2 = vpop.f32.mrf.mxu1 }
 0x147   :  { %v1177_v4 = vpack.i.bf16 %v569_v61, %v1236_v5  ;;  %v597_v6 = vpack.c.bf16 %v569_v61, %v569_v61  ;;  %v1112_v63 = vld [vmem:[%s1606_s4 + $0x8] sm:$0xf] }
 0x148   :  { %v1462_v7 = vpack.c.bf16 %v570_v62, %v570_v62  ;;  %v1192_v8 = vpack.i.bf16 %v570_v62, %v569_v61 }
 0x149   :  { %1178 = vrot.lane.b32.xlu0 %v1177_v4, %s1237_s30  ;;  %604 = vrot.lane.b32.xlu1 %v597_v6, %s1234_s26  ;;  %v792_v39 = vsel %vm112_vm3, %v597_v6, 0 }
 0x14a   :  { %606 = vrot.lane.b32.xlu2 %v1462_v7, %s1234_s26  ;;  %v795_v52 = vsel %vm112_vm3, %v1462_v7, 0 }
 0x151   :  { %583 = vrot.lane.b32.xlu0 %v570_v62, %s1235_s29  ;;  %684 = vrot.lane.b32.xlu1 %v570_v62, %s1237_s30 }
 0x152   :  { %1183 = vrot.lane.b32.xlu2 %v1177_v4, %s1235_s29 }
 0x159   :  { %1193 = vrot.lane.b32.xlu0 %v1192_v8, %s1240_s9  ;;  %1188 = vrot.lane.b32.xlu1 %v1177_v4, %s1238_s0 }
 0x15a   :  { %737 = vrot.lane.b32.xlu2 %v570_v62, %s1238_s0 }
 0x161   :  { %835 = vrot.lane.b32.xlu0 %v1236_v5, %s1239_s8  ;;  %888 = vrot.lane.b32.xlu1 %v1236_v5, %s1240_s9 }
 0x162   :  { %1198 = vrot.lane.b32.xlu2 %v1192_v8, %s1239_s8 }
 0x169   :  { %945 = vrot.lane.b32.xlu0 %v597_v6, %s1241_s10  ;;  %1203 = vrot.lane.b32.xlu1 %v1192_v8, %s1242_s11 }
 0x16a   :  { %994 = vrot.lane.b32.xlu2 %v1236_v5, %s1242_s11 }
 0x171   :  { %1046 = vperm.xlu0 %1175, %v1043_v9   ;;  %947 = vrot.lane.b32.xlu1 %v1462_v7, %s1241_s10 }
 0x172   :  { %949 = vrot.lane.b32.xlu2 %v1233_v1, %s1241_s10  ;;  %v591_v1 = vld [vmem:[%s1606_s4] sm:$0xf] }
 0x179   :  { %1054 = vperm.xlu1 %1176, %v1051_v10  }
 0x1a4   :  { %v607_v12 = vpop.permute.xlu2 %606 }
 0x1ac   :  { %v1184_v13 = vpop.permute.xlu2 %1183 }
 0x1ad   :  { %v1186_v5 = vunpack.i.h.bf16 %v1184_v13  ;;  %v1185_v14 = vunpack.i.l.bf16 %v1184_v13 }
 0x1af   :  { %v585_v16 = vsel %vm81_vm4, %v1185_v14, %v1186_v5 }
 0x1b0   :  { %v589_v17 = vsel %vm1350_vm6, 0.0, %v585_v16  ;;  %v1115_v16 = vld [vmem:[%s1606_s4 + $0xc] sm:$0xf] }
 0x1b1   :  { %v592_v18 = vpack.c.bf16 %v589_v17, %v589_v17 }
 0x1b3   :  { %v649_v19 = vsel %vm112_vm3, %v592_v18, 0 }
 0x1b4   :  { %661 = vmatpush.bf16.msrb.mxu0 %v649_v19  ;;  %v738_v20 = vpop.permute.xlu2 %737 }
 0x1b7   :  { %1110 = vmatmul.msk.bf16.vlgmr.msrb.gmra.mxu0 %vm108_vm5, %v591_v1 }
 0x1bb   :  { %v1179_v21 = vpop.permute.xlu0 %1178  ;;  %v605_v22 = vpop.permute.xlu1 %604 }
 0x1bc   :  { %v1181_v23 = vunpack.i.h.bf16 %v1179_v21  ;;  %v1180_v24 = vunpack.i.l.bf16 %v1179_v21  ;;  %v608_v25 = vsel %vm105_vm2, %v603_v11, %v605_v22  ;;  %v609_v26 = vsel %vm105_vm2, %v605_v22, %v607_v12  ;;  %v1199_v33 = vpop.permute.xlu2 %1198 }
 0x1bd   :  { %v614_v27 = vsel %vm112_vm3, %v608_v25, 0  ;;  %v617_v28 = vsel %vm112_vm3, %v609_v26, 0  ;;  %v1201_v40 = vunpack.i.h.bf16 %v1199_v33  ;;  %v1200_v41 = vunpack.i.l.bf16 %v1199_v33 }
 0x1be   :  { %v686_v29 = vsel %vm190_vm0, %v1180_v24, %v1181_v23  ;;  %626 = vmatpush.bf16.msra.mxu2 %v614_v27  ;;  %639 = vmatpush.bf16.msra.mxu3 %v617_v28 }
 0x1bf   :  { %v690_v31 = vsel %vm1335_vm1, 0.0, %v686_v29  ;;  %v837_v49 = vsel %vm343_vm11, %v1200_v41, %v1201_v40  ;;  %v1118_v29 = vld [vmem:[%s1606_s4 + $0x10] sm:$0xf]  ;;  %v1121_v41 = vld [vmem:[%s1606_s4 + $0x14] sm:$0xf] }
 0x1c0   :  { %v694_v32 = vpack.c.bf16 %v690_v31, %v690_v31  ;;  %v841_v55 = vsel %vm1335_vm1, 0.0, %v837_v49 }
 0x1c1   :  { %1108 = vmatmul.msk.bf16.vlgmr.msra.gmra.mxu2 %vm108_vm5, %v1107_v30  ;;  %1109 = vmatmul.msk.bf16.vlgmr.msra.gmra.mxu3 %vm108_vm5, %v1107_v30  ;;  %v845_v7 = vpack.c.bf16 %v841_v55, %v841_v55 }
 0x1c2   :  { %v700_v36 = vsel %vm112_vm3, %v694_v32, 0 }
 0x1c3   :  { %712 = vmatpush.bf16.msrb.mxu2 %v700_v36  ;;  %v584_v37 = vpop.permute.xlu0 %583  ;;  %v685_v38 = vpop.permute.xlu1 %684  ;;  %v851_v14 = vsel %vm112_vm3, %v845_v7, 0 }
 0x1c4   :  { %v586_v42 = vsel %vm81_vm4, %v1186_v5, %v584_v37  ;;  %v687_v44 = vsel %vm190_vm0, %v1181_v23, %v685_v38  ;;  %v995_v22 = vpop.permute.xlu2 %994 }
 0x1c5   :  { %v590_v45 = vsel %vm1354_vm7, 0.0, %v586_v42  ;;  %v691_v46 = vsel %vm1367_vm8, 0.0, %v687_v44 }
 0x1c6   :  { %v593_v47 = vpack.c.bf16 %v590_v45, %v590_v45  ;;  %v695_v48 = vpack.c.bf16 %v691_v46, %v691_v46  ;;  %v1124_v45 = vld [vmem:[%s1606_s4 + $0x18] sm:$0xf]  ;;  %v1127_v46 = vld [vmem:[%s1606_s4 + $0x1c] sm:$0xf] }
 0x1c7   :  { %804 = vmatpush.bf16.msra.mxu2 %v792_v39 }
 0x1c8   :  { %v652_v50 = vsel %vm112_vm3, %v593_v47, 0  ;;  %v703_v51 = vsel %vm112_vm3, %v695_v48, 0  ;;  %v1130_v47 = vld [vmem:[%s1606_s4 + $0x20] sm:$0xf]  ;;  %s1244_s4 = smov [#allocation3]  }
 0x1c9   :  { %674 = vmatpush.bf16.msrb.mxu1 %v652_v50  ;;  %725 = vmatpush.bf16.msrb.mxu3 %v703_v51  ;;  %s1070_s28 = sshll.u32 %s1244_s4, 4  ;;  %s1071_s28 = int_to_ptr.vmem [resolvable:$true] %s1070_s28 }
 0x1cb   :  { %v1194_v53 = vpop.permute.xlu0 %1193  ;;  %v1189_v54 = vpop.permute.xlu1 %1188 }
 0x1cc   :  { %v1196_v56 = vunpack.i.h.bf16 %v1194_v53  ;;  %v1195_v57 = vunpack.i.l.bf16 %v1194_v53  ;;  %v1191_v58 = vunpack.i.h.bf16 %v1189_v54  ;;  %v1190_v59 = vunpack.i.l.bf16 %v1189_v54  ;;  %1111 = vmatmul.msk.bf16.vlgmr.msrb.gmra.mxu1 %vm108_vm5, %v591_v1  ;;  %v950_v36 = vpop.permute.xlu2 %949 }
 0x1cd   :  { %817 = vmatpush.bf16.msra.mxu3 %v795_v52 }
 0x1ce   :  { %v890_v60 = vsel %vm397_vm10, %v1195_v57, %v1196_v56  ;;  %v739_v61 = vsel %vm244_vm9, %v1190_v59, %v1191_v58  ;;  %v740_v62 = vsel %vm244_vm9, %v1191_v58, %v738_v20 }
 0x1cf   :  { %v894_v2 = vsel %vm1350_vm6, 0.0, %v890_v60  ;;  %v743_v4 = vsel %vm1350_vm6, 0.0, %v739_v61  ;;  %v744_v6 = vsel %vm1354_vm7, 0.0, %v740_v62 }
 0x1d0   :  { %v898_v8 = vpack.c.bf16 %v894_v2, %v894_v2  ;;  %v747_v9 = vpack.c.bf16 %v743_v4, %v743_v4  ;;  %v748_v10 = vpack.c.bf16 %v744_v6, %v744_v6 }
 0x1d1   :  { %1113 = vmatmul.msk.bf16.vlgmr.msrb.gmra.mxu2 %vm108_vm5, %v1112_v63  ;;  %1114 = vmatmul.msk.bf16.vlgmr.msrb.gmra.mxu3 %vm108_vm5, %v1112_v63 }
 0x1d2   :  { %v904_v11 = vsel %vm112_vm3, %v898_v8, 0  ;;  %v753_v12 = vsel %vm112_vm3, %v747_v9, 0  ;;  %v756_v13 = vsel %vm112_vm3, %v748_v10, 0 }
 0x1d3   :  { %v836_v5 = vpop.permute.xlu0 %835  ;;  %916 = vmatpush.bf16.msrb.mxu2 %v904_v11  ;;  %v889_v34 = vpop.permute.xlu1 %888  ;;  %765 = vmatpush.bf16.msra.mxu0 %v753_v12 }
 0x1d4   :  { %v838_v17 = vsel %vm343_vm11, %v1201_v40, %v836_v5  ;;  %v891_v18 = vsel %vm397_vm10, %v1196_v56, %v889_v34  ;;  %778 = vmatpush.bf16.msra.mxu1 %v756_v13 }
 0x1d5   :  { %v842_v19 = vsel %vm1367_vm8, 0.0, %v838_v17  ;;  %v895_v1 = vsel %vm1354_vm7, 0.0, %v891_v18 }
 0x1d6   :  { %v846_v20 = vpack.c.bf16 %v842_v19, %v842_v19  ;;  %v899_v21 = vpack.c.bf16 %v895_v1, %v895_v1  ;;  %1116 = vmatmul.msk.bf16.vlgmr.msra.gmra.mxu0 %vm108_vm5, %v1115_v16 }
 0x1d7   :  { %863 = vmatpush.bf16.msrb.mxu0 %v851_v14 }
 0x1d8   :  { %v854_v23 = vsel %vm112_vm3, %v846_v20, 0  ;;  %v907_v24 = vsel %vm112_vm3, %v899_v21, 0 }
 0x1d9   :  { %876 = vmatpush.bf16.msrb.mxu1 %v854_v23  ;;  %929 = vmatpush.bf16.msrb.mxu3 %v907_v24 }
 0x1db   :  { %v1204_v25 = vpop.permute.xlu1 %1203  ;;  %v946_v39 = vpop.permute.xlu0 %945 }
 0x1dc   :  { %v1206_v26 = vunpack.i.h.bf16 %v1204_v25  ;;  %v1205_v27 = vunpack.i.l.bf16 %v1204_v25  ;;  %1117 = vmatmul.msk.bf16.vlgmr.msra.gmra.mxu1 %vm108_vm5, %v1115_v16 }
 0x1de   :  { %v996_v28 = vsel %vm505_vm13, %v1205_v27, %v1206_v26  ;;  %v997_v35 = vsel %vm505_vm13, %v1206_v26, %v995_v22 }
 0x1df   :  { %v1001_v30 = vsel %vm1367_vm8, 0.0, %v997_v35  ;;  %v1000_v31 = vsel %vm1335_vm1, 0.0, %v996_v28 }
 0x1e0   :  { %v1005_v32 = vpack.c.bf16 %v1001_v30, %v1001_v30  ;;  %v1004_v33 = vpack.c.bf16 %v1000_v31, %v1000_v31 }
 0x1e1   :  { %1119 = vmatmul.msk.bf16.vlgmr.msra.gmra.mxu2 %vm108_vm5, %v1118_v29  ;;  %1120 = vmatmul.msk.bf16.vlgmr.msra.gmra.mxu3 %vm108_vm5, %v1118_v29 }
 0x1e2   :  { %v1010_v37 = vsel %vm112_vm3, %v1004_v33, 0  ;;  %v1013_v38 = vsel %vm112_vm3, %v1005_v32, 0 }
 0x1e3   :  { %1022 = vmatpush.bf16.msra.mxu2 %v1010_v37  ;;  %v948_v40 = vpop.permute.xlu1 %947  ;;  %1035 = vmatpush.bf16.msra.mxu3 %v1013_v38  ;;  %v1047_v37 = vpop.permute.xlu0 %1046 }
 0x1e4   :  { %v951_v43 = vsel %vm459_vm12, %v946_v39, %v948_v40  ;;  %v952_v15 = vsel %vm459_vm12, %v948_v40, %v950_v36 }
 0x1e5   :  { %v957_v42 = vsel %vm112_vm3, %v951_v43, 0  ;;  %v960_v44 = vsel %vm112_vm3, %v952_v15, 0 }
 0x1e6   :  { %969 = vmatpush.bf16.msra.mxu0 %v957_v42  ;;  %982 = vmatpush.bf16.msra.mxu1 %v960_v44 }
 0x1e7   :  { %1122 = vmatmul.msk.bf16.vlgmr.msrb.gmra.mxu0 %vm108_vm5, %v1121_v41 }
 0x1eb   :  { %v1055_v40 = vpop.permute.xlu1 %1054 }
 0x1ec   :  { %1123 = vmatmul.msk.bf16.vlgmr.msrb.gmra.mxu1 %vm108_vm5, %v1121_v41 }
 0x1f1   :  { %1125 = vmatmul.msk.bf16.vlgmr.msrb.gmra.mxu2 %vm108_vm5, %v1124_v45  ;;  %1126 = vmatmul.msk.bf16.vlgmr.msrb.gmra.mxu3 %vm108_vm5, %v1124_v45 }
 0x1f7   :  { %1128 = vmatmul.msk.bf16.vlgmr.msra.gmra.mxu0 %vm108_vm5, %v1127_v46 }
 0x1fc   :  { %1129 = vmatmul.msk.bf16.vlgmr.msra.gmra.mxu1 %vm108_vm5, %v1127_v46 }
 0x201   :  { %1131 = vmatmul.msk.bf16.vlgmr.msra.gmra.mxu2 %vm108_vm5, %v1130_v47  ;;  %1132 = vmatmul.msk.bf16.vlgmr.msra.gmra.mxu3 %vm108_vm5, %v1130_v47 }
 0x234   :  { %v663_v48 = vpop.f32.mrf.mxu0 }
 0x23c   :  { %v665_v49 = vpop.f32.mrf.mxu0 }
 0x244   :  { %v628_v50 = vpop.f32.mrf.mxu2  ;;  %v641_v51 = vpop.f32.mrf.mxu3 }
 0x245   :  { %v664_v11 = vadd.f32 %v663_v48, %v628_v50 }
 0x249   :  { %v676_v52 = vpop.f32.mrf.mxu1 }
 0x24a   :  { %v677_v16 = vadd.f32 %v676_v52, %v641_v51 }
 0x24c   :  { %v630_v53 = vpop.f32.mrf.mxu2  ;;  %v643_v54 = vpop.f32.mrf.mxu3 }
 0x251   :  { %v678_v55 = vpop.f32.mrf.mxu1 }
 0x253   :  { %v767_v56 = vpop.f32.mrf.mxu0 }
 0x254   :  { %v714_v57 = vpop.f32.mrf.mxu2  ;;  %v727_v58 = vpop.f32.mrf.mxu3 }
 0x255   :  { %v731_v13 = vadd.f32 %v714_v57, %v664_v11  ;;  %v732_v18 = vadd.f32 %v727_v58, %v677_v16 }
 0x257   :  { %v784_v17 = vadd.f32 %v767_v56, %v731_v13 }
 0x259   :  { %v780_v59 = vpop.f32.mrf.mxu1 }
 0x25a   :  { %v785_v20 = vadd.f32 %v780_v59, %v732_v18 }
 0x25b   :  { %v769_v60 = vpop.f32.mrf.mxu0 }
 0x25c   :  { %v716_v61 = vpop.f32.mrf.mxu2  ;;  %v729_v62 = vpop.f32.mrf.mxu3 }
 0x261   :  { %v782_v63 = vpop.f32.mrf.mxu1 }
 0x264   :  { %v806_v2 = vpop.f32.mrf.mxu2  ;;  %v819_v4 = vpop.f32.mrf.mxu3 }
 0x265   :  { %v865_v6 = vpop.f32.mrf.mxu0  ;;  %v823_v19 = vadd.f32 %v806_v2, %v784_v17  ;;  %v824_v23 = vadd.f32 %v819_v4, %v785_v20 }
 0x267   :  { %v882_v24 = vadd.f32 %v865_v6, %v823_v19 }
 0x269   :  { %v878_v7 = vpop.f32.mrf.mxu1 }
 0x26a   :  { %v883_v26 = vadd.f32 %v878_v7, %v824_v23 }
 0x26c   :  { %v808_v8 = vpop.f32.mrf.mxu2  ;;  %v821_v9 = vpop.f32.mrf.mxu3 }
 0x26d   :  { %v867_v10 = vpop.f32.mrf.mxu0 }
 0x271   :  { %v880_v12 = vpop.f32.mrf.mxu1 }
 0x274   :  { %v918_v5 = vpop.f32.mrf.mxu2  ;;  %v931_v34 = vpop.f32.mrf.mxu3 }
 0x275   :  { %v971_v14 = vpop.f32.mrf.mxu0  ;;  %v935_v27 = vadd.f32 %v918_v5, %v882_v24  ;;  %v936_v28 = vadd.f32 %v931_v34, %v883_v26 }
 0x277   :  { %v988_v29 = vadd.f32 %v971_v14, %v935_v27 }
 0x279   :  { %v984_v1 = vpop.f32.mrf.mxu1 }
 0x27a   :  { %v989_v30 = vadd.f32 %v984_v1, %v936_v28 }
 0x27c   :  { %v920_v21 = vpop.f32.mrf.mxu2  ;;  %v933_v22 = vpop.f32.mrf.mxu3 }
 0x27d   :  { %v973_v25 = vpop.f32.mrf.mxu0 }
 0x281   :  { %v986_v35 = vpop.f32.mrf.mxu1 }
 0x284   :  { %v1024_v31 = vpop.f32.mrf.mxu2  ;;  %v1037_v32 = vpop.f32.mrf.mxu3 }
 0x285   :  { %v1041_v33 = vadd.f32 %v1024_v31, %v988_v29  ;;  %v1042_v36 = vadd.f32 %v1037_v32, %v989_v30 }
 0x287   :  { %v1049_v38 = vmul.f32 %v1047_v37, %v1041_v33  ;;  %v1050_v39 = vmul.f32 %v1047_v37, %v1042_v36 }
 0x289   :  { %v1057_v43 = vadd.f32 %v1055_v40, %v1049_v38  ;;  %v1058_v15 = vadd.f32 %v1055_v40, %v1050_v39 }
 0x28b   :  { %v1059_v41 = vadd.f32 %v1057_v43, %v1299_v3  ;;  %v1060_v42 = vadd.f32 %v1058_v15, %v1288_v0 }
 0x28c   :  { %v1026_v44 = vpop.f32.mrf.mxu2  ;;  %v1039_v45 = vpop.f32.mrf.mxu3 }
 0x28d   :  { %v1061_v46 = vmax.f32 %v1059_v41, 0.0  ;;  %v1062_v47 = vmax.f32 %v1060_v42, 0.0 }
 0x28f   :  { %1063 = vst [vmem:[#allocation3] sm:$0xff] %v1061_v46 }
 0x290   :  { %1064 = vst [vmem:[#allocation3 + $0x8] sm:$0xff] %v1062_v47 }
 0x291   :  { %1075 = dma.vmem_to_hbm [thread:$0]  %s1071_s28, 256, %s1073_s12, [#allocation4]  }
 0x292   :  { %1231 = dma.done.wait [#allocation4], 256  }
 0x293   :  { %1232 = vsyncadd [#allocation4], 4294967040 }
 0x294   :  { %1080 = vsyncpa [#allocation4], 1 }

</bundles_post_ra>
